<compile_context>
chip_gen: v6e
topology: v6e:2x2x1
jax: 0.10.0
libtpu: 0.0.40
codegen_flags: <defaults>
</compile_context>

<pallas_src>
import jax
import jax.numpy as jnp
from jax.experimental import pallas as pl
from jax.experimental.pallas import tpu as pltpu


THRESHOLD = 0.2


def _round_up(x, m):
    return ((x + m - 1) // m) * m


def _neuralfs_kernel(x_ref, pw_ref, w1_ref, b1_ref, w2_ref, b2_ref, out_ref):
    x = x_ref[...]                                   # (TB, F_pad) f32
    pw = pw_ref[...]                                 # (1,  F_pad) f32, broadcast over batch

    # nonlinear_func (tanh) -> EUP
    nl = jnp.tanh(x)

    # pairwise connection
    p = nl * pw

    # Thresholded_Linear + feature selection, fused:
    #   ((p > t) | (p < -t)) * p  then  x * thr   ==   where(|p| > t, x*p, 0)
    sel = jnp.where(jnp.abs(p) > THRESHOLD, x * p, 0.0)

    # decision_net: Flatten -> Linear(F,H) -> ReLU -> Linear(H,C), bf16 MXU / f32 accumulate.
    sel_bf = sel.astype(jnp.bfloat16)
    h = jnp.dot(sel_bf, w1_ref[...], preferred_element_type=jnp.float32) + b1_ref[...]
    h_bf = jnp.maximum(h, 0.0).astype(jnp.bfloat16)
    out = jnp.dot(h_bf, w2_ref[...], preferred_element_type=jnp.float32) + b2_ref[...]
    out_ref[...] = out.astype(out_ref.dtype)


def multivariate_neuralfs_forward(x, pairwise_weights, w1, b1, w2, b2, *, max_tb=1024):
    """x: (B, D1, D2); pairwise_weights: (D1, D2); decision net: (F,H),(H,),(H,C),(C,)."""
    B, D1, D2 = x.shape
    F = D1 * D2
    H = w1.shape[1]
    C = w2.shape[1]

    F_pad = _round_up(F, 128)
    H_pad = _round_up(H, 128)
    C_pad = _round_up(C, 128)

    # --- glue reshapes / zero-padding (exact; padded features contribute nothing) ---
    x_flat = x.reshape(B, F)
    if F_pad != F:
        # Only materializes an HBM copy of x when F is not already lane-aligned.
        x_flat = jnp.pad(x_flat, ((0, 0), (0, F_pad - F)))
    pw_flat = jnp.pad(pairwise_weights.reshape(1, F), ((0, 0), (0, F_pad - F)))
    w1_p = jnp.pad(w1, ((0, F_pad - F), (0, H_pad - H))).astype(jnp.bfloat16)
    b1_p = jnp.pad(b1, (0, H_pad - H)).reshape(1, H_pad).astype(jnp.float32)
    w2_p = jnp.pad(w2, ((0, H_pad - H), (0, C_pad - C))).astype(jnp.bfloat16)
    b2_p = jnp.pad(b2, (0, C_pad - C)).reshape(1, C_pad).astype(jnp.float32)

    # --- capability probes -----------------------------------------------------------
    try:
        vmem_capacity = int(pltpu.get_tpu_info().vmem_capacity_bytes)
    except Exception:
        vmem_capacity = 64 << 20          # conservative fallback = v7x per-core VMEM

    try:
        pl.BlockSpec((1, 128), lambda i: (0, 0), pipeline_mode=pl.Buffered(1))
        buffered_ok = True
    except TypeError:
        buffered_ok = False

    def _const_spec(shape, imap):
        if buffered_ok:
            return pl.BlockSpec(shape, imap, pipeline_mode=pl.Buffered(1))
        return pl.BlockSpec(shape, imap)

    # --- VMEM budget -> batch tile size ----------------------------------------------
    BF16, F32 = 2, 4
    weight_bytes = (F32 * F_pad                      # pairwise weights (f32)
                    + BF16 * F_pad * H_pad           # w1 (bf16)
                    + F32 * H_pad                    # b1
                    + BF16 * H_pad * C_pad           # w2 (bf16)
                    + F32 * C_pad)                   # b2
    wmult = 1 if buffered_ok else 2                  # Pallas double-buffers unless Buffered(1)

    per_row_bytes = (2 * F32 * F_pad                 # x tile (double-buffered)
                     + 2 * F32 * C_pad               # out tile (double-buffered)
                     + F32 * H_pad                   # f32 hidden activation
                     + BF16 * F_pad                  # bf16 sel staging
                     + F32 * F_pad)                  # one f32 elementwise temp

    budget = int(0.70 * vmem_capacity)
    avail = budget - wmult * weight_bytes
    tb_budget = max(avail // per_row_bytes, 8)
    tb_cap = max(8, (min(max_tb, int(tb_budget)) // 8) * 8)

    num_tiles = pl.cdiv(B, tb_cap)
    if num_tiles == 1 and B >= 16:
        num_tiles = 2                                # keep both v7x TensorCores busy
    TB = min(_round_up(pl.cdiv(B, num_tiles), 8), tb_cap)
    if TB >= 128 and _round_up(TB, 128) <= tb_cap:
        TB = _round_up(TB, 128)                      # full MXU M-tiles when batch is large
    grid_b = pl.cdiv(B, TB)

    vmem_need = wmult * weight_bytes + TB * per_row_bytes
    vmem_limit = max(int(vmem_need * 1.25) + (2 << 20), 16 << 20)
    vmem_limit = min(vmem_limit, int(0.9 * vmem_capacity))

    cost = pl.CostEstimate(
        flops=int(2 * B * F_pad * H_pad + 2 * B * H_pad * C_pad + 6 * B * F_pad),
        transcendentals=int(B * F_pad),
        bytes_accessed=int(F32 * (B * F_pad + B * C_pad + F_pad + H_pad + C_pad)
                           + BF16 * (F_pad * H_pad + H_pad * C_pad)),
    )

    out = pl.pallas_call(
        _neuralfs_kernel,
        out_shape=jax.ShapeDtypeStruct((B, C_pad), jnp.float32),
        grid=(grid_b,),
        in_specs=[
            pl.BlockSpec((TB, F_pad), lambda i: (i, 0)),      # x: batch-tiled, pipelined
            _const_spec((1, F_pad), lambda i: (0, 0)),        # pairwise weights (resident)
            _const_spec((F_pad, H_pad), lambda i: (0, 0)),    # w1 (resident, bf16)
            _const_spec((1, H_pad), lambda i: (0, 0)),        # b1 (resident)
            _const_spec((H_pad, C_pad), lambda i: (0, 0)),    # w2 (resident, bf16)
            _const_spec((1, C_pad), lambda i: (0, 0)),        # b2 (resident)
        ],
        out_specs=pl.BlockSpec((TB, C_pad), lambda i: (i, 0)),
        compiler_params=pltpu.CompilerParams(
            dimension_semantics=("parallel",),
            vmem_limit_bytes=vmem_limit,
        ),
        cost_estimate=cost,
    )(x_flat, pw_flat, w1_p, b1_p, w2_p, b2_p)

    # Drop class padding outside the kernel (pure slice, no compute; no batch padding exists).
    return out[:, :C]


def reference_forward(x, pairwise_weights, w1, b1, w2, b2):
    nl = jnp.tanh(x)
    p = nl * pairwise_weights[None, :, :]
    thr = jnp.where((p > THRESHOLD) | (p < -THRESHOLD), p, 0.0)
    sel = x * thr
    sel_flat = sel.reshape(x.shape[0], -1)
    h = jnp.maximum(sel_flat @ w1 + b1, 0.0)
    return h @ w2 + b2


if __name__ == "__main__":
    key = jax.random.PRNGKey(0)
    kx, kpw, kw1, kb1, kw2, kb2 = jax.random.split(key, 6)

    # small shapes consistent with the module: input_dim = [D1, D2]
    B, D1, D2 = 8, 8, 16
    F = D1 * D2
    H, C = 32, 4

    x = jax.random.normal(kx, (B, D1, D2), dtype=jnp.float32)

    # pairwise_weights: torch.nn.init.uniform_ default is U[0, 1)
    pairwise_weights = jax.random.uniform(kpw, (D1, D2), dtype=jnp.float32)

    # decision_net params: Linear default-style init U[-1/sqrt(fan_in), 1/sqrt(fan_in)]
    lim1 = 1.0 / jnp.sqrt(F)
    w1 = jax.random.uniform(kw1, (F, H), minval=-lim1, maxval=lim1, dtype=jnp.float32)
    b1 = jax.random.uniform(kb1, (H,), minval=-lim1, maxval=lim1, dtype=jnp.float32)
    lim2 = 1.0 / jnp.sqrt(H)
    w2 = jax.random.uniform(kw2, (H, C), minval=-lim2, maxval=lim2, dtype=jnp.float32)
    b2 = jax.random.uniform(kb2, (C,), minval=-lim2, maxval=lim2, dtype=jnp.float32)

    out = multivariate_neuralfs_forward(x, pairwise_weights, w1, b1, w2, b2)
    out = jax.block_until_ready(out)

    ref = reference_forward(x, pairwise_weights, w1, b1, w2, b2)
    assert out.shape == (B, C), f"bad shape {out.shape}"
    # Tolerance relaxed for bf16 MXU matmuls (f32 accumulation) vs f32 reference.
    assert jnp.allclose(out, ref, atol=3e-2, rtol=3e-2), (
        f"mismatch vs reference, max abs diff = {jnp.max(jnp.abs(out - ref))}")

    print("KERNEL_OK")
</pallas_src>

<mosaic_0001>
module attributes {stable_mosaic.version = 11 : i64} {
  func.func @_neuralfs_kernel(%arg0: i32, %arg1: memref<8x128xf32, #tpu.memory_space<vmem>>, %arg2: memref<1x128xf32, #tpu.memory_space<vmem>>, %arg3: memref<128x128xbf16, #tpu.memory_space<vmem>>, %arg4: memref<1x128xf32, #tpu.memory_space<vmem>>, %arg5: memref<128x128xbf16, #tpu.memory_space<vmem>>, %arg6: memref<1x128xf32, #tpu.memory_space<vmem>>, %arg7: memref<8x128xf32, #tpu.memory_space<vmem>>) attributes {dimension_semantics = [#tpu.dimension_semantics<parallel>], iteration_bounds = array<i64: 1>, scalar_prefetch = 0 : i64, scratch_operands = 0 : i64, tpu.core_type = #tpu.core_type<tc>, window_params = [{transform_indices = @transform_0, window_bounds = array<i64: 8, 128>}, {pipeline_mode = #tpu.pipeline_mode<synchronous>, transform_indices = @transform_1, window_bounds = array<i64: 1, 128>}, {pipeline_mode = #tpu.pipeline_mode<synchronous>, transform_indices = @transform_2, window_bounds = array<i64: 128, 128>}, {pipeline_mode = #tpu.pipeline_mode<synchronous>, transform_indices = @transform_3, window_bounds = array<i64: 1, 128>}, {pipeline_mode = #tpu.pipeline_mode<synchronous>, transform_indices = @transform_4, window_bounds = array<i64: 128, 128>}, {pipeline_mode = #tpu.pipeline_mode<synchronous>, transform_indices = @transform_5, window_bounds = array<i64: 1, 128>}, {transform_indices = @transform_6, window_bounds = array<i64: 8, 128>}]} {
    %c0 = arith.constant 0 : index
    %c0_0 = arith.constant 0 : index
    %0 = vector.load %arg1[%c0, %c0_0] : memref<8x128xf32, #tpu.memory_space<vmem>>, vector<8x128xf32>
    %c0_1 = arith.constant 0 : index
    %c0_2 = arith.constant 0 : index
    %1 = vector.load %arg2[%c0_1, %c0_2] : memref<1x128xf32, #tpu.memory_space<vmem>>, vector<1x128xf32>
    %2 = math.tanh %0 : vector<8x128xf32>
    %3 = vector.broadcast %1 : vector<1x128xf32> to vector<8x128xf32>
    %4 = arith.mulf %2, %3 : vector<8x128xf32>
    %5 = math.absf %4 : vector<8x128xf32>
    %cst = arith.constant 2.000000e-01 : f32
    %6 = vector.broadcast %cst : f32 to vector<8x128xf32>
    %7 = arith.cmpf ogt, %5, %6 : vector<8x128xf32>
    %8 = arith.mulf %0, %4 : vector<8x128xf32>
    %cst_3 = arith.constant 0.000000e+00 : f32
    %9 = vector.broadcast %cst_3 : f32 to vector<8x128xf32>
    %10 = arith.select %7, %8, %9 : vector<8x128xi1>, vector<8x128xf32>
    %11 = arith.truncf %10 : vector<8x128xf32> to vector<8x128xbf16>
    %c0_4 = arith.constant 0 : index
    %c0_5 = arith.constant 0 : index
    %12 = vector.load %arg3[%c0_4, %c0_5] : memref<128x128xbf16, #tpu.memory_space<vmem>>, vector<128x128xbf16>
    %cst_6 = arith.constant dense<0.000000e+00> : vector<8x128xf32>
    %13 = tpu.matmul %11, %12, %cst_6 {dimension_numbers = #tpu.dot_dimension_numbers<[1], [0], [0], [1], [0, 0, 1, 1], [], []>} : vector<8x128xbf16>, vector<128x128xbf16>, vector<8x128xf32> -> vector<8x128xf32>
    %c0_7 = arith.constant 0 : index
    %c0_8 = arith.constant 0 : index
    %14 = vector.load %arg4[%c0_7, %c0_8] : memref<1x128xf32, #tpu.memory_space<vmem>>, vector<1x128xf32>
    %15 = vector.broadcast %14 : vector<1x128xf32> to vector<8x128xf32>
    %16 = arith.addf %13, %15 : vector<8x128xf32>
    %cst_9 = arith.constant 0.000000e+00 : f32
    %17 = vector.broadcast %cst_9 : f32 to vector<8x128xf32>
    %18 = arith.maximumf %16, %17 : vector<8x128xf32>
    %19 = arith.truncf %18 : vector<8x128xf32> to vector<8x128xbf16>
    %c0_10 = arith.constant 0 : index
    %c0_11 = arith.constant 0 : index
    %20 = vector.load %arg5[%c0_10, %c0_11] : memref<128x128xbf16, #tpu.memory_space<vmem>>, vector<128x128xbf16>
    %cst_12 = arith.constant dense<0.000000e+00> : vector<8x128xf32>
    %21 = tpu.matmul %19, %20, %cst_12 {dimension_numbers = #tpu.dot_dimension_numbers<[1], [0], [0], [1], [0, 0, 1, 1], [], []>} : vector<8x128xbf16>, vector<128x128xbf16>, vector<8x128xf32> -> vector<8x128xf32>
    %c0_13 = arith.constant 0 : index
    %c0_14 = arith.constant 0 : index
    %22 = vector.load %arg6[%c0_13, %c0_14] : memref<1x128xf32, #tpu.memory_space<vmem>>, vector<1x128xf32>
    %23 = vector.broadcast %22 : vector<1x128xf32> to vector<8x128xf32>
    %24 = arith.addf %21, %23 : vector<8x128xf32>
    %c0_15 = arith.constant 0 : index
    %c0_16 = arith.constant 0 : index
    %25 = vector.load %arg7[%c0_15, %c0_16] : memref<8x128xf32, #tpu.memory_space<vmem>>, vector<8x128xf32>
    tpu.vector_store %arg7[%c0_15, %c0_16], %24 {strides = array<i32>} : memref<8x128xf32, #tpu.memory_space<vmem>>, vector<8x128xf32>,
    return
  }
  func.func @transform_0(%arg0: i32) -> (i32, i32) {
    %c0_i32 = arith.constant 0 : i32
    %c0_i32_0 = arith.constant 0 : i32
    return %arg0, %c0_i32 : i32, i32
  }
  func.func @transform_1(%arg0: i32) -> (i32, i32) {
    %c0_i32 = arith.constant 0 : i32
    %c0_i32_0 = arith.constant 0 : i32
    %c0_i32_1 = arith.constant 0 : i32
    return %c0_i32, %c0_i32_0 : i32, i32
  }
  func.func @transform_2(%arg0: i32) -> (i32, i32) {
    %c0_i32 = arith.constant 0 : i32
    %c0_i32_0 = arith.constant 0 : i32
    %c0_i32_1 = arith.constant 0 : i32
    return %c0_i32, %c0_i32_0 : i32, i32
  }
  func.func @transform_3(%arg0: i32) -> (i32, i32) {
    %c0_i32 = arith.constant 0 : i32
    %c0_i32_0 = arith.constant 0 : i32
    %c0_i32_1 = arith.constant 0 : i32
    return %c0_i32, %c0_i32_0 : i32, i32
  }
  func.func @transform_4(%arg0: i32) -> (i32, i32) {
    %c0_i32 = arith.constant 0 : i32
    %c0_i32_0 = arith.constant 0 : i32
    %c0_i32_1 = arith.constant 0 : i32
    return %c0_i32, %c0_i32_0 : i32, i32
  }
  func.func @transform_5(%arg0: i32) -> (i32, i32) {
    %c0_i32 = arith.constant 0 : i32
    %c0_i32_0 = arith.constant 0 : i32
    %c0_i32_1 = arith.constant 0 : i32
    return %c0_i32, %c0_i32_0 : i32, i32
  }
  func.func @transform_6(%arg0: i32) -> (i32, i32) {
    %c0_i32 = arith.constant 0 : i32
    %c0_i32_0 = arith.constant 0 : i32
    return %arg0, %c0_i32 : i32, i32
  }
}

</mosaic_0001>

<bundles_post_ra>
// kernel: tpu_custom_call.1
= control target key start
LH: loop header
LB: loop body
LE: loop exit
PB: predicated region body
PF: predicated region fallthrough
CT: control target
= control target key end

     0   :  { %11 = vsyncpa [#allocation3], 0  ;;  %s576_s0 = inlined_call_operand.hbm [shape: f32[8,128], index: 0, kind: input, shape index: {}]   ;;  %s577_s1 = inlined_call_operand.vmem [shape: f32[1,128], index: 1, kind: input, shape index: {}]   ;;  %s578_s2 = inlined_call_operand.hbm [shape: bf16[128,128], index: 2, kind: input, shape index: {}]   ;;  %s579_s3 = inlined_call_operand.vmem [shape: f32[1,128], index: 3, kind: input, shape index: {}]   ;;  %s580_s4 = inlined_call_operand.hbm [shape: bf16[128,128], index: 4, kind: input, shape index: {}]   ;;  %s581_s5 = inlined_call_operand.vmem [shape: f32[1,128], index: 5, kind: input, shape index: {}]   ;;  %s582_s6 = inlined_call_operand.hbm [shape: f32[8,128], index: 6, kind: output, shape index: {}]  }
   0x1   :  { %12 = vsyncpa [#allocation6], 0 }
   0x2   :  { %13 = vsyncpa [#allocation4], 0  ;;  %s512_s21 = smov [#allocation5]  }
   0x3   :  { %s31_s22 = sshll.u32 %s512_s21, 4  ;;  %s32_s22 = int_to_ptr.vmem [resolvable:$true] %s31_s22 }
   0x4   :  { %s434_s23 = scalar_lea.vmem %s32_s22, 1024  ;;  %p439_p1 = scmp.lt.s32.totalorder %s32_s22, %s32_s22 }
   0x5   :  { %p435_p0 = scmp.ne.s32.totalorder %s32_s22, %s434_s23  ;;  %p440_p2 = scmp.lt.s32.totalorder %s434_s23, %s434_s23 }
   0x7   :  { %p441_p3 = por %p440_p2, %p439_p1 }
   0x9   :  { %p442_p4 = pnand %p441_p3, %p435_p0 }
   0xb   :  { %445 = shalt.err (!%p442_p4)
}
   0xc   :  { %s513_s24 = smov 64   ;;  %s514_s25 = smov 4  }
   0xd   :  { %37 = dma.hbm_to_vmem [thread:$0]  %s578_s2, 1024, %s32_s22, [#allocation6], %s513_s24, %s513_s24, %s514_s25  }
   0xe   :  { %s515_s28 = smov [#allocation2]   ;;  %s516_s30 = smov [#allocation7]  }
   0xf   :  { %s20_s29 = sshll.u32 %s515_s28, 4  ;;  %s45_s7 = sshll.u32 %s516_s30, 4  ;;  %s21_s29 = int_to_ptr.vmem [resolvable:$true] %s20_s29  ;;  %s46_s7 = int_to_ptr.vmem [resolvable:$true] %s45_s7 }
  0x10   :  { %s454_s8 = scalar_lea.vmem %s21_s29, 128  ;;  %p459_p6 = scmp.lt.s32.totalorder %s21_s29, %s21_s29 }
  0x11   :  { %p455_p5 = scmp.ne.s32.totalorder %s21_s29, %s454_s8  ;;  %p460_p7 = scmp.lt.s32.totalorder %s454_s8, %s454_s8 }
  0x13   :  { %p461_p8 = por %p460_p7, %p459_p6 }
  0x15   :  { %p462_p9 = pnand %p461_p8, %p455_p5 }
  0x17   :  { %465 = shalt.err (!%p462_p9)
}
  0x18   :  { %23 = dma.hbm_to_vmem [thread:$0]  %s576_s0, 128, %s21_s29, [#allocation3]  }
  0x19   :  { %s474_s11 = scalar_lea.vmem %s46_s7, 1024  ;;  %p479_p11 = scmp.lt.s32.totalorder %s46_s7, %s46_s7 }
  0x1a   :  { %p475_p10 = scmp.ne.s32.totalorder %s46_s7, %s474_s11  ;;  %p480_p12 = scmp.lt.s32.totalorder %s474_s11, %s474_s11 }
  0x1c   :  { %p481_p13 = por %p480_p12, %p479_p11 }
  0x1e   :  { %p482_p0 = pnand %p481_p13, %p475_p10 }
  0x20   :  { %485 = shalt.err (!%p482_p0)
}
  0x21   :  { %51 = dma.hbm_to_vmem [thread:$0]  %s580_s4, 1024, %s46_s7, [#allocation6], %s513_s24, %s513_s24, %s514_s25  }
  0x22   :  { %506 = dma.done.wait [#allocation3], 128  }
  0x23   :  { %507 = vsyncadd [#allocation3], 4294967168 }
  0x24   :  { %508 = dma.done.wait [#allocation6], 2048  }
  0x25   :  { %509 = vsyncadd [#allocation6], 4294965248  ;;  %v517_v0 = vmov 0.0   ;;  %vm518_vm0 = vmmov 0   ;;  %v408_v1 = vld [vmem:[#allocation5 + $0x38] sm:$0xff]   ;;  %v409_v2 = vld [vmem:[#allocation5 + $0x30] sm:$0xff]  }
  0x26   :  { %360 = vmatprep.subr.bf16.mxu0 %v517_v0  ;;  %376 = vmatprep.mubr.msk.bf16.mxu0 %vm518_vm0, %v517_v0  ;;  %v410_v3 = vld [vmem:[#allocation5 + $0x28] sm:$0xff]   ;;  %v64_v4 = vld [vmem:[#allocation2] sm:$0xff]  ;;  %v411_v6 = vld [vmem:[#allocation5 + $0x20] sm:$0xff]   ;;  %s519_s16 = smov [#allocation8]  }
  0x27   :  { %380 = vmatprep.subr.bf16.mxu1 %v517_v0  ;;  %396 = vmatprep.mubr.msk.bf16.mxu1 %vm518_vm0, %v517_v0  ;;  %424 = vtanh.f32 %v64_v4  ;;  %v416_v5 = vld [vmem:[#allocation7 + $0x38] sm:$0xff]   ;;  %v417_v7 = vld [vmem:[#allocation7 + $0x30] sm:$0xff]   ;;  %v418_v9 = vld [vmem:[#allocation7 + $0x28] sm:$0xff]   ;;  %s310_s17 = sshll.u32 %s519_s16, 4  ;;  %s311_s17 = int_to_ptr.vmem [resolvable:$true] %s310_s17 }
  0x28   :  { %361 = vmatpush3.bf16.msra.mxu0 %v408_v1  ;;  %381 = vmatpush3.bf16.msra.mxu1 %v416_v5  ;;  %v412_v8 = vld [vmem:[#allocation5 + $0x18] sm:$0xff]   ;;  %v413_v10 = vld [vmem:[#allocation5 + $0x10] sm:$0xff]   ;;  %v419_v11 = vld [vmem:[#allocation7 + $0x20] sm:$0xff]   ;;  %p491_p2 = scmp.lt.s32.totalorder %s311_s17, %s311_s17 }
  0x29   :  { %362 = vmatprep.subr.bf16.mxu0 %v517_v0  ;;  %382 = vmatprep.subr.bf16.mxu1 %v517_v0  ;;  %v320_v12 = vld [vmem:[%s577_s1] ss:$0 sm:$0xff]  ;;  %v414_v14 = vld [vmem:[#allocation5 + $0x8] sm:$0xff]   ;;  %v415_v19 = vld [vmem:[#allocation5] sm:$0xff]  }
  0x2a   :  { %v420_v16 = vld [vmem:[#allocation7 + $0x18] sm:$0xff]   ;;  %v421_v20 = vld [vmem:[#allocation7 + $0x10] sm:$0xff]   ;;  %v422_v22 = vld [vmem:[#allocation7 + $0x8] sm:$0xff]  }
  0x2b   :  { %v423_v23 = vld [vmem:[#allocation7] sm:$0xff]   ;;  %v321_v24 = vld [vmem:[%s579_s3] ss:$0 sm:$0xff]  ;;  %s486_s3 = scalar_lea.vmem %s311_s17, 128 }
  0x2c   :  { %363 = vmatpush3.bf16.msra.mxu0 %v409_v2  ;;  %383 = vmatpush3.bf16.msra.mxu1 %v417_v7  ;;  %v333_v32 = vld [vmem:[%s581_s5] ss:$0 sm:$0xff]  ;;  %p487_p1 = scmp.ne.s32.totalorder %s311_s17, %s486_s3  ;;  %p492_p3 = scmp.lt.s32.totalorder %s486_s3, %s486_s3 }
  0x2d   :  { %364 = vmatprep.subr.bf16.mxu0 %v517_v0  ;;  %384 = vmatprep.subr.bf16.mxu1 %v517_v0 }
  0x2e   :  { %p493_p4 = por %p492_p3, %p491_p2 }
  0x30   :  { %365 = vmatpush3.bf16.msra.mxu0 %v410_v3  ;;  %385 = vmatpush3.bf16.msra.mxu1 %v418_v9  ;;  %p494_p5 = pnand %p493_p4, %p487_p1 }
  0x31   :  { %366 = vmatprep.subr.bf16.mxu0 %v517_v0  ;;  %386 = vmatprep.subr.bf16.mxu1 %v517_v0 }
  0x34   :  { %367 = vmatpush3.bf16.msra.mxu0 %v411_v6  ;;  %v425_v13 = vpop.eup %424  ;;  %387 = vmatpush3.bf16.msra.mxu1 %v419_v11 }
  0x35   :  { %368 = vmatprep.subr.bf16.mxu0 %v517_v0  ;;  %v73_v15 = vmul.f32 %v425_v13, %v320_v12  ;;  %388 = vmatprep.subr.bf16.mxu1 %v517_v0 }
  0x37   :  { %v74_v17 = vand.u32 2147483647, %v73_v15  ;;  %v76_v18 = vmul.f32 %v73_v15, %v64_v4 }
  0x38   :  { %369 = vmatpush3.bf16.msra.mxu0 %v412_v8  ;;  %389 = vmatpush3.bf16.msra.mxu1 %v420_v16 }
  0x39   :  { %370 = vmatprep.subr.bf16.mxu0 %v517_v0  ;;  %vm75_vm1 = vcmp.gt.f32.partialorder %v74_v17, 0.2  ;;  %390 = vmatprep.subr.bf16.mxu1 %v517_v0  ;;  %v331_v21 = vpack.c.bf16 %v76_v18, %v76_v18 }
  0x3a   :  { %vm330_vm2 = vmpackc.low %vm75_vm1, %vm75_vm1 }
  0x3c   :  { %371 = vmatpush3.bf16.msra.mxu0 %v413_v10  ;;  %391 = vmatpush3.bf16.msra.mxu1 %v421_v20 }
  0x3d   :  { %372 = vmatprep.subr.bf16.mxu0 %v517_v0  ;;  %392 = vmatprep.subr.bf16.mxu1 %v517_v0 }
  0x40   :  { %373 = vmatpush3.bf16.msra.mxu0 %v414_v14  ;;  %393 = vmatpush3.bf16.msra.mxu1 %v422_v22 }
  0x41   :  { %374 = vmatprep.subr.bf16.mxu0 %v517_v0  ;;  %394 = vmatprep.subr.bf16.mxu1 %v517_v0 }
  0x44   :  { %375 = vmatpush3.bf16.msra.mxu0 %v415_v19  ;;  %395 = vmatpush3.bf16.msra.mxu1 %v423_v23 }
  0x47   :  { %377 = vmatmul.mubr.msk.bf16.vlgmr.msra.gmra.mxu0 %vm330_vm2, %v331_v21 }
 0x107   :  { %v184_v25 = vpop.f32.mrf.mxu0 }
 0x108   :  { %v185_v26 = vadd.f32 %v321_v24, %v184_v25 }
 0x109   :  { %v378_v27 = vpop.f32.mrf.mxu0 }
 0x10a   :  { %v190_v28 = vmax.f32 %v185_v26, 0.0 }
 0x10b   :  { %v187_v29 = vpop.f32.mrf.mxu0 }
 0x10c   :  { %v191_v30 = vpack.c.bf16 %v190_v28, %v190_v28 }
 0x10d   :  { %v379_v31 = vpop.f32.mrf.mxu0 }
 0x10e   :  { %397 = vmatmul.mubr.bf16.vlgmr.msra.gmra.mxu1 %v191_v30 }
 0x1ce   :  { %v297_v33 = vpop.f32.mrf.mxu1 }
 0x1cf   :  { %v298_v34 = vadd.f32 %v333_v32, %v297_v33 }
 0x1d0   :  { %v398_v35 = vpop.f32.mrf.mxu1 }
 0x1d1   :  { %303 = vst [vmem:[#allocation8] sm:$0xff] %v298_v34 }
 0x1d2   :  { %v300_v36 = vpop.f32.mrf.mxu1 }
 0x1d3   :  { %497 = shalt.err (!%p494_p5)
}
 0x1d4   :  { %313 = dma.vmem_to_hbm [thread:$0]  %s311_s17, 128, %s582_s6, [#allocation4]   ;;  %v399_v37 = vpop.f32.mrf.mxu1 }
 0x1d5   :  { %510 = dma.done.wait [#allocation4], 128  }
 0x1d6   :  { %511 = vsyncadd [#allocation4], 4294967168 }
 0x1d7   :  { %317 = vsyncpa [#allocation3], 1 }
 0x1d8   :  { %318 = vsyncpa [#allocation6], 1 }
 0x1d9   :  { %319 = vsyncpa [#allocation4], 1 }

</bundles_post_ra>
